<compile_context>
chip_gen: v7x
topology: tpu7x:2x2x1
jax: 0.10.0
libtpu: 0.0.40
codegen_flags: <defaults>
</compile_context>

<pallas_src>
import functools

import jax
import jax.numpy as jnp
from jax.experimental import pallas as pl
from jax.experimental.pallas import tpu as pltpu


def _i_softmax_kernel(x_ref, y_ref, data_ref, loss_ref, *, mm, inv_mm, n, inv_b):
    x = x_ref[...]                      # (C, TB) f32 — classes on sublanes, batch on lanes
    y = y_ref[...]                      # (1, TB) int32 label (-1 for padded columns)
    c, tb = x.shape

    # boolean mask selecting each sample's target-class row
    cls = jax.lax.broadcasted_iota(jnp.int32, (c, tb), 0)
    mask = cls == y                                               # (C, TB) bool
    valid = y >= 0                                                # (1, TB) bool

    # gather the target logit per sample (masked 4-sublane reduce)
    t = jnp.sum(jnp.where(mask, x, 0.0), axis=0, keepdims=True)   # (1, TB)

    # margin transform; reciprocal of (m + 1e-5) hoisted to trace time
    val = jnp.where(t > 0, t * inv_mm - n, t * mm - n)            # (1, TB)

    # scatter the transformed value back with a single select
    data = jnp.where(mask, val, x)                                # (C, TB)
    data_ref[...] = data

    # log_softmax pieces along the class (sublane) axis
    mx = jnp.max(data, axis=0, keepdims=True)                     # (1, TB)
    lse = jnp.log(jnp.sum(jnp.exp(data - mx), axis=0, keepdims=True))

    # target log-prob is simply val - mx - lse (data at the target row == val);
    # padded columns (label == -1) are zeroed via `valid` so they contribute
    # exactly 0.  Pre-scaled by -1/B so the wrapper only sums per-tile partials.
    tgt_logp = jnp.where(valid, val - mx - lse, 0.0)              # (1, TB)
    partial = jnp.sum(tgt_logp)
    loss_ref[...] = jnp.full(loss_ref.shape, -partial * inv_b, loss_ref.dtype)


def _round_up(x, mult):
    return ((x + mult - 1) // mult) * mult


def i_softmax(source_output1, source_label, m, n, *, block_b=8192):
    """Pallas implementation of I_Softmax.forward().

    Args:
      source_output1: [B, C] float32 logits (C = 4 classes).
      source_label:   [B]    int    labels in {0,1,2,3}.
      m, n:           python floats (margin parameters).
      block_b:        batch tile size along the lane axis (rounded to 128).

    Returns: (data [B, C], label [B], loss scalar) — matching the PyTorch module.
    """
    B, C = source_output1.shape

    # _combine(): regroup rows by class, preserving original order within a
    # class. Pure data movement -> stable argsort in plain JAX (glue).
    # TODO(synk): for very large B this gather + transpose could be fused into
    # the kernel with PrefetchScalarGridSpec block-granular gathers to avoid
    # one extra HBM round-trip of the logits.
    order = jnp.argsort(source_label, stable=True)
    x_sorted = source_output1[order].astype(jnp.float32)           # (B, C)
    y_sorted = source_label[order].astype(jnp.int32)                # (B,)

    # lane-dense layout: classes on sublanes, batch on the 128-wide lane axis
    tb = min(_round_up(block_b, 128), _round_up(B, 128))
    num_tiles = pl.cdiv(B, tb)
    b_pad = num_tiles * tb

    x_t = jnp.pad(x_sorted.T, ((0, 0), (0, b_pad - B)))             # (C, b_pad)
    y_t = jnp.pad(y_sorted, (0, b_pad - B), constant_values=-1)[None, :]  # (1, b_pad)

    mm = float(m) + 1e-5
    kernel = functools.partial(
        _i_softmax_kernel,
        mm=mm,
        inv_mm=1.0 / mm,
        n=float(n),
        inv_b=1.0 / B,
    )

    data_t, partials = pl.pallas_call(
        kernel,
        out_shape=(
            jax.ShapeDtypeStruct((C, b_pad), jnp.float32),           # data, lane-dense
            jax.ShapeDtypeStruct((num_tiles, 8, 128), jnp.float32),  # per-tile loss partials
        ),
        grid=(num_tiles,),
        in_specs=[
            pl.BlockSpec((C, tb), lambda i: (0, i)),                 # x  (C, TB)
            pl.BlockSpec((1, tb), lambda i: (0, i)),                 # y  (1, TB)
        ],
        out_specs=(
            pl.BlockSpec((C, tb), lambda i: (0, i)),                 # data (C, TB)
            pl.BlockSpec((1, 8, 128), lambda i: (i, 0, 0)),          # loss partial block
        ),
        compiler_params=pltpu.CompilerParams(
            dimension_semantics=("parallel",)),
    )(x_t, y_t)

    data = data_t[:, :B].T                                           # back to [B, C]
    loss = jnp.sum(partials[:, 0, 0])                                # partials already * (-1/B)
    return data, y_sorted, loss


def _reference(x, y, m, n):
    """Pure-JAX reference mirroring the PyTorch module, for a sanity check."""
    order = jnp.argsort(y, stable=True)
    xs = x[order]
    ys = y[order]
    t = jnp.take_along_axis(xs, ys[:, None], axis=1)
    mm = m + 1e-5
    val = jnp.where(t > 0, t / mm - n, t * mm - n)
    onehot = jax.nn.one_hot(ys, xs.shape[1], dtype=xs.dtype)
    data = xs * (1.0 - onehot) + val * onehot
    logp = jax.nn.log_softmax(data, axis=-1)
    loss = -jnp.mean(jnp.take_along_axis(logp, ys[:, None], axis=1))
    return data, ys, loss


if __name__ == "__main__":
    key = jax.random.PRNGKey(0)
    kx, ky = jax.random.split(key)

    B, C = 8, 4           # 4 classes, as implied by the module (labels 0..3)
    m, n = 2.0, 0.5

    source_output1 = jax.random.normal(kx, (B, C), dtype=jnp.float32) * 2.0
    source_label = jax.random.randint(ky, (B,), 0, 4, dtype=jnp.int32)

    data, label, loss = i_softmax(source_output1, source_label, m, n)
    jax.block_until_ready((data, label, loss))

    ref_data, ref_label, ref_loss = _reference(source_output1, source_label, m, n)
    assert jnp.allclose(data, ref_data, atol=1e-5, rtol=1e-5)
    assert jnp.array_equal(label, ref_label)
    assert jnp.allclose(loss, ref_loss, atol=1e-5, rtol=1e-5)

    print("KERNEL_OK")
</pallas_src>

<mosaic_0001>
module attributes {stable_mosaic.version = 11 : i64} {
  func.func @_i_softmax_kernel(%arg0: i32, %arg1: memref<4x128xf32, #tpu.memory_space<vmem>>, %arg2: memref<1x128xi32, #tpu.memory_space<vmem>>, %arg3: memref<4x128xf32, #tpu.memory_space<vmem>>, %arg4: memref<1x8x128xf32, #tpu.memory_space<vmem>>) attributes {dimension_semantics = [#tpu.dimension_semantics<parallel>], iteration_bounds = array<i64: 1>, scalar_prefetch = 0 : i64, scratch_operands = 0 : i64, tpu.core_type = #tpu.core_type<tc>, window_params = [{transform_indices = @transform_0, window_bounds = array<i64: 4, 128>}, {transform_indices = @transform_1, window_bounds = array<i64: 1, 128>}, {transform_indices = @transform_2, window_bounds = array<i64: 4, 128>}, {transform_indices = @transform_3, window_bounds = array<i64: 1, 8, 128>}]} {
    %c0 = arith.constant 0 : index
    %c0_0 = arith.constant 0 : index
    %0 = vector.load %arg1[%c0, %c0_0] : memref<4x128xf32, #tpu.memory_space<vmem>>, vector<4x128xf32>
    %c0_1 = arith.constant 0 : index
    %c0_2 = arith.constant 0 : index
    %1 = vector.load %arg2[%c0_1, %c0_2] : memref<1x128xi32, #tpu.memory_space<vmem>>, vector<1x128xi32>
    %2 = tpu.iota {dimensions = array<i32: 0>} : vector<4x128xi32>
    %3 = vector.broadcast %1 : vector<1x128xi32> to vector<4x128xi32>
    %4 = arith.cmpi eq, %2, %3 : vector<4x128xi32>
    %c0_i32 = arith.constant 0 : i32
    %5 = vector.broadcast %c0_i32 : i32 to vector<1x128xi32>
    %6 = arith.cmpi sge, %1, %5 : vector<1x128xi32>
    %cst = arith.constant 0.000000e+00 : f32
    %7 = vector.broadcast %cst : f32 to vector<4x128xf32>
    %8 = arith.select %4, %0, %7 : vector<4x128xi1>, vector<4x128xf32>
    %cst_3 = arith.constant dense<0.000000e+00> : vector<128xf32>
    %9 = vector.multi_reduction <add>, %8, %cst_3 [0] : vector<4x128xf32> to vector<128xf32>
    %10 = vector.shape_cast %9 : vector<128xf32> to vector<1x128xf32>
    %cst_4 = arith.constant 0.000000e+00 : f32
    %11 = vector.broadcast %cst_4 : f32 to vector<1x128xf32>
    %12 = arith.cmpf ogt, %10, %11 : vector<1x128xf32>
    %cst_5 = arith.constant 0.499997497 : f32
    %13 = vector.broadcast %cst_5 : f32 to vector<1x128xf32>
    %14 = arith.mulf %10, %13 : vector<1x128xf32>
    %cst_6 = arith.constant 5.000000e-01 : f32
    %15 = vector.broadcast %cst_6 : f32 to vector<1x128xf32>
    %16 = arith.subf %14, %15 : vector<1x128xf32>
    %cst_7 = arith.constant 2.000010e+00 : f32
    %17 = vector.broadcast %cst_7 : f32 to vector<1x128xf32>
    %18 = arith.mulf %10, %17 : vector<1x128xf32>
    %cst_8 = arith.constant 5.000000e-01 : f32
    %19 = vector.broadcast %cst_8 : f32 to vector<1x128xf32>
    %20 = arith.subf %18, %19 : vector<1x128xf32>
    %21 = arith.select %12, %16, %20 : vector<1x128xi1>, vector<1x128xf32>
    %22 = vector.shape_cast %21 : vector<1x128xf32> to vector<1x128xf32>
    %23 = vector.broadcast %22 : vector<1x128xf32> to vector<4x128xf32>
    %24 = arith.select %4, %23, %0 : vector<4x128xi1>, vector<4x128xf32>
    %c0_9 = arith.constant 0 : index
    %c0_10 = arith.constant 0 : index
    %25 = vector.load %arg3[%c0_9, %c0_10] : memref<4x128xf32, #tpu.memory_space<vmem>>, vector<4x128xf32>
    tpu.vector_store %arg3[%c0_9, %c0_10], %24 {strides = array<i32>} : memref<4x128xf32, #tpu.memory_space<vmem>>, vector<4x128xf32>,
    %cst_11 = arith.constant dense<0xFF800000> : vector<128xf32>
    %26 = vector.multi_reduction <maximumf>, %24, %cst_11 [0] : vector<4x128xf32> to vector<128xf32>
    %27 = vector.shape_cast %26 : vector<128xf32> to vector<1x128xf32>
    %28 = vector.broadcast %27 : vector<1x128xf32> to vector<4x128xf32>
    %29 = arith.subf %24, %28 : vector<4x128xf32>
    %30 = math.exp %29 : vector<4x128xf32>
    %cst_12 = arith.constant dense<0.000000e+00> : vector<128xf32>
    %31 = vector.multi_reduction <add>, %30, %cst_12 [0] : vector<4x128xf32> to vector<128xf32>
    %32 = vector.shape_cast %31 : vector<128xf32> to vector<1x128xf32>
    %33 = math.log %32 : vector<1x128xf32>
    %34 = arith.subf %21, %27 : vector<1x128xf32>
    %35 = arith.subf %34, %33 : vector<1x128xf32>
    %cst_13 = arith.constant 0.000000e+00 : f32
    %36 = vector.broadcast %cst_13 : f32 to vector<1x128xf32>
    %37 = arith.select %6, %35, %36 : vector<1x128xi1>, vector<1x128xf32>
    %38 = vector.shape_cast %37 : vector<1x128xf32> to vector<1x1x128xf32>
    %cst_14 = arith.constant dense<0.000000e+00> : vector<1xf32>
    %39 = vector.multi_reduction <add>, %38, %cst_14 [1, 2] : vector<1x1x128xf32> to vector<1xf32>
    %40 = vector.shape_cast %39 : vector<1xf32> to vector<1x1x1xf32>
    %41 = vector.extract %40[0, 0, 0] : f32 from vector<1x1x1xf32>
    %cst_15 = arith.constant 0.000000e+00 : f32
    %42 = arith.subf %cst_15, %41 : f32
    %cst_16 = arith.constant 1.250000e-01 : f32
    %43 = arith.mulf %42, %cst_16 : f32
    %44 = vector.broadcast %43 : f32 to vector<1x8x128xf32>
    %c0_17 = arith.constant 0 : index
    %c0_18 = arith.constant 0 : index
    %c0_19 = arith.constant 0 : index
    %45 = vector.load %arg4[%c0_17, %c0_18, %c0_19] : memref<1x8x128xf32, #tpu.memory_space<vmem>>, vector<1x8x128xf32>
    tpu.vector_store %arg4[%c0_17, %c0_18, %c0_19], %44 {strides = array<i32>} : memref<1x8x128xf32, #tpu.memory_space<vmem>>, vector<1x8x128xf32>,
    return
  }
  func.func @transform_0(%arg0: i32) -> (i32, i32) {
    %c0_i32 = arith.constant 0 : i32
    %c0_i32_0 = arith.constant 0 : i32
    return %c0_i32, %arg0 : i32, i32
  }
  func.func @transform_1(%arg0: i32) -> (i32, i32) {
    %c0_i32 = arith.constant 0 : i32
    %c0_i32_0 = arith.constant 0 : i32
    return %c0_i32, %arg0 : i32, i32
  }
  func.func @transform_2(%arg0: i32) -> (i32, i32) {
    %c0_i32 = arith.constant 0 : i32
    %c0_i32_0 = arith.constant 0 : i32
    return %c0_i32, %arg0 : i32, i32
  }
  func.func @transform_3(%arg0: i32) -> (i32, i32, i32) {
    %c0_i32 = arith.constant 0 : i32
    %c0_i32_0 = arith.constant 0 : i32
    %c0_i32_1 = arith.constant 0 : i32
    return %arg0, %c0_i32, %c0_i32_0 : i32, i32, i32
  }
}

</mosaic_0001>

<bundles_post_ra>
// kernel: tpu_custom_call.1
= control target key start
LH: loop header
LB: loop body
LE: loop exit
PB: predicated region body
PF: predicated region fallthrough
CT: control target
= control target key end

     0   :  { %9 = vsyncpa [#allocation3], 0  ;;  %s268_s0 = inlined_call_operand.hbm [shape: f32[4,128], index: 0, kind: input, shape index: {}]   ;;  %s269_s1 = inlined_call_operand.vmem [shape: s32[1,128], index: 1, kind: input, shape index: {}]   ;;  %s270_s2 = inlined_call_operand.hbm [shape: f32[4,128], index: 2, kind: output, shape index: {0}]   ;;  %s271_s3 = inlined_call_operand.hbm [shape: f32[1,8,128], index: 3, kind: output, shape index: {1}]  }
   0x1   :  { %10 = vsyncpa [#allocation4], 0 }
   0x2   :  { %11 = vsyncpa [#allocation7], 0  ;;  %s203_s12 = smov [#allocation2]   ;;  %s131_s16 = scalar_lea.hbm %s268_s0, 64 }
   0x3   :  { %s18_s13 = sshll.u32 %s203_s12, 4  ;;  %p132_p0 = scmp.ne.s32.totalorder %s268_s0, %s131_s16  ;;  %s19_s13 = int_to_ptr.vmem [resolvable:$true] %s18_s13 }
   0x4   :  { %p135_p1 = scmp.lt.u32.totalorder %s131_s16, %s268_s0 }
   0x6   :  { %p137_p2 = pnand %p135_p1, %p132_p0 }
   0x8   :  { %140 = shalt.err (!%p137_p2)
}
   0x9   :  { %s141_s21 = scalar_lea.vmem %s19_s13, 64  ;;  %p146_p4 = scmp.lt.s32.totalorder %s19_s13, %s19_s13 }
   0xa   :  { %p142_p3 = scmp.ne.s32.totalorder %s19_s13, %s141_s21  ;;  %p147_p5 = scmp.lt.s32.totalorder %s141_s21, %s141_s21 }
   0xc   :  { %p148_p6 = por %p147_p5, %p146_p4 }
   0xe   :  { %p149_p7 = pnand %p148_p6, %p142_p3 }
  0x10   :  { %152 = shalt.err (!%p149_p7)
}
  0x11   :  { %21 = dma.hbm_to_vmem [thread:$0]  %s268_s0, 64, %s19_s13, [#allocation3]  }
  0x12   :  { %197 = dma.done.wait [#allocation3], 64  }
  0x13   :  { %198 = vsyncadd [#allocation3], 4294967232  ;;  %v29_v0 = vlaneseq  ;;  %v28_v3 = vld [vmem:[%s269_s1] sm:$0x1]  ;;  %vm38_vm0 = vcmask 1043456   ;;  %vm76_vm4 = vcmask 1040384  }
  0x14   :  { %v27_v4 = vld [vmem:[#allocation2] sm:$0xf]  ;;  %vm36_vm3 = vcmp.ge.s32.totalorder %v28_v3, 0  ;;  %s204_s0 = smov [#allocation5]  }
  0x15   :  { %v30_v1 = vshrl.u32 %v29_v0, 7  ;;  %s97_s1 = sshll.u32 %s204_s0, 4  ;;  %s98_s1 = int_to_ptr.vmem [resolvable:$true] %s97_s1 }
  0x16   :  { %s153_s26 = scalar_lea.vmem %s98_s1, 64  ;;  %p158_p9 = scmp.lt.s32.totalorder %s98_s1, %s98_s1 }
  0x17   :  { %v33_v2 = vsub.s32 0, %v30_v1  ;;  %p154_p8 = scmp.ne.s32.totalorder %s98_s1, %s153_s26  ;;  %p159_p10 = scmp.lt.s32.totalorder %s153_s26, %s153_s26 }
  0x19   :  { %v34_v5 = vrot.slane %v28_v3, %v33_v2  ;;  %p160_p11 = por %p159_p10, %p158_p9 }
  0x1b   :  { %vm35_vm1 = vcmp.eq.s32.totalorder %v30_v1, %v34_v5  ;;  %p161_p12 = pnand %p160_p11, %p154_p8 }
  0x1c   :  { %v37_v6 = vsel %vm35_vm1, %v27_v4, 0.0 }
  0x1d   :  { %v39_v7 = vsel %vm38_vm0, %v37_v6, 0.0 }
  0x1e   :  { %v40_v8 = vrot.slane %v39_v7, 4 }
  0x20   :  { %v41_v9 = vadd.f32 %v40_v8, %v39_v7 }
  0x22   :  { %v42_v10 = vrot.slane %v41_v9, 2 }
  0x24   :  { %v43_v11 = vadd.f32 %v42_v10, %v41_v9 }
  0x26   :  { %v44_v12 = vrot.slane %v43_v11, 1 }
  0x28   :  { %v45_v13 = vadd.f32 %v44_v12, %v43_v11 }
  0x2a   :  { %v47_v14 = vmul.f32 0.4999975, %v45_v13  ;;  %v49_v15 = vmul.f32 2.00001, %v45_v13  ;;  %vm46_vm2 = vcmp.gt.f32.partialorder %v45_v13, 0.0 }
  0x2c   :  { %v120_v16 = vadd.f32 -0.5, %v47_v14  ;;  %v121_v17 = vadd.f32 -0.5, %v49_v15 }
  0x2e   :  { %v51_v18 = vsel %vm46_vm2, %v120_v16, %v121_v17 }
  0x2f   :  { %v52_v19 = vsel %vm35_vm1, %v51_v18, %v27_v4 }
  0x30   :  { %v54_v20 = vsel %vm38_vm0, %v52_v19, -inf  ;;  %53 = vst [vmem:[#allocation5] sm:$0xf] %v52_v19 }
  0x31   :  { %v55_v21 = vrot.slane %v54_v20, 4 }
  0x33   :  { %v56_v22 = vmax.f32 %v54_v20, %v55_v21 }
  0x35   :  { %v57_v23 = vrot.slane %v56_v22, 2 }
  0x37   :  { %v58_v24 = vmax.f32 %v56_v22, %v57_v23 }
  0x39   :  { %v59_v25 = vrot.slane %v58_v24, 1 }
  0x3b   :  { %v60_v26 = vmax.f32 %v58_v24, %v59_v25 }
  0x3d   :  { %v61_v27 = vsub.f32 %v52_v19, %v60_v26  ;;  %v73_v37 = vsub.f32 %v51_v18, %v60_v26 }
  0x3f   :  { %v62_v28 = vmul.f32 1.442695, %v61_v27 }
  0x41   :  { %127 = vpow2.f32 %v62_v28 }
  0x4b   :  { %v128_v29 = vpop.eup %127 }
  0x4c   :  { %v64_v30 = vsel %vm38_vm0, %v128_v29, 0.0 }
  0x4d   :  { %v65_v31 = vrot.slane %v64_v30, 4 }
  0x4f   :  { %v66_v32 = vadd.f32 %v65_v31, %v64_v30 }
  0x51   :  { %v67_v33 = vrot.slane %v66_v32, 2 }
  0x53   :  { %v68_v34 = vadd.f32 %v67_v33, %v66_v32 }
  0x55   :  { %v69_v35 = vrot.slane %v68_v34, 1 }
  0x57   :  { %v70_v36 = vadd.f32 %v69_v35, %v68_v34 }
  0x59   :  { %129 = vlog2.f32 %v70_v36 }
  0x63   :  { %v130_v38 = vpop.eup %129 }
  0x64   :  { %v72_v39 = vmul.f32 0.6931472, %v130_v38 }
  0x66   :  { %v74_v40 = vsub.f32 %v73_v37, %v72_v39 }
  0x68   :  { %v75_v41 = vsel %vm36_vm3, %v74_v40, 0.0 }
  0x69   :  { %v77_v42 = vsel %vm76_vm4, %v75_v41, 0.0 }
  0x6a   :  { %78 = vadd.xlane.f32.xlu0 %v77_v42 }
  0x6b   :  { %164 = shalt.err (!%p161_p12)
}
  0x6c   :  { %s165_s29 = scalar_lea.hbm %s270_s2, 64 }
  0x6d   :  { %p166_p13 = scmp.ne.s32.totalorder %s270_s2, %s165_s29  ;;  %p169_p0 = scmp.lt.u32.totalorder %s165_s29, %s270_s2 }
  0x6f   :  { %p171_p1 = pnand %p169_p0, %p166_p13 }
  0x71   :  { %174 = shalt.err (!%p171_p1)
}
  0x72   :  { %100 = dma.vmem_to_hbm [thread:$0]  %s98_s1, 64, %s270_s2, [#allocation4]  }
  0x73   :  { %s205_s11 = smov [#allocation6]  }
  0x74   :  { %s107_s12 = sshll.u32 %s205_s11, 4  ;;  %s108_s12 = int_to_ptr.vmem [resolvable:$true] %s107_s12 }
  0x75   :  { %s175_s14 = scalar_lea.vmem %s108_s12, 128  ;;  %p180_p3 = scmp.lt.s32.totalorder %s108_s12, %s108_s12 }
  0x76   :  { %p176_p2 = scmp.ne.s32.totalorder %s108_s12, %s175_s14  ;;  %p181_p4 = scmp.lt.s32.totalorder %s175_s14, %s175_s14 }
  0x78   :  { %p182_p5 = por %p181_p4, %p180_p3 }
  0x7a   :  { %p183_p6 = pnand %p182_p5, %p176_p2 }
  0xf7   :  { %v79_v43 = vpop.xlane.xlu0 %78 }
  0xf8   :  { %v80_v44 = vrot.slane %v79_v43, 4 }
  0xfa   :  { %v81_v45 = vadd.f32 %v80_v44, %v79_v43 }
  0xfc   :  { %v82_v46 = vrot.slane %v81_v45, 2 }
  0xfe   :  { %v83_v47 = vadd.f32 %v82_v46, %v81_v45 }
 0x100   :  { %v84_v48 = vrot.slane %v83_v47, 1 }
 0x102   :  { %v85_v49 = vadd.f32 %v84_v48, %v83_v47 }
 0x104   :  { %122 = vpush %v85_v49 }
 0x135   :  { %s123_s9 = spop %122 }
 0x136   :  { %s87_s10 = ssub.f32 0.0, %s123_s9 }
 0x138   :  { %s88_s13 = smul.f32 0.125, %s87_s10 }
 0x13a   :  { %v89_v50 = vstv %s88_s13 }
 0x13b   :  { %90 = vst [vmem:[#allocation6] sm:$0xff] %v89_v50 }
 0x13c   :  { %186 = shalt.err (!%p183_p6)
}
 0x13d   :  { %s187_s16 = scalar_lea.hbm %s271_s3, 128 }
 0x13e   :  { %p188_p7 = scmp.ne.s32.totalorder %s271_s3, %s187_s16  ;;  %p191_p8 = scmp.lt.u32.totalorder %s187_s16, %s271_s3 }
 0x140   :  { %p193_p9 = pnand %p191_p8, %p188_p7 }
 0x142   :  { %196 = shalt.err (!%p193_p9)
}
 0x143   :  { %110 = dma.vmem_to_hbm [thread:$0]  %s108_s12, 128, %s271_s3, [#allocation7]  }
 0x144   :  { %199 = dma.done.wait [#allocation4], 64  }
 0x145   :  { %200 = vsyncadd [#allocation4], 4294967232 }
 0x146   :  { %201 = dma.done.wait [#allocation7], 128  }
 0x147   :  { %202 = vsyncadd [#allocation7], 4294967168 }
 0x148   :  { %117 = vsyncpa [#allocation3], 1 }
 0x149   :  { %118 = vsyncpa [#allocation4], 1 }
 0x14a   :  { %119 = vsyncpa [#allocation7], 1 }

</bundles_post_ra>
